<compile_context>
chip_gen: v5e
topology: v5e:2x2
jax: 0.10.0
libtpu: 0.0.40
codegen_flags: <defaults>
</compile_context>

<pallas_src>
import jax
import jax.numpy as jnp
from jax.experimental import pallas as pl
from jax.experimental.pallas import tpu as pltpu

EPS = 1e-05
_MAX_ROW_TILE = 512


def _prod(xs):
    p = 1
    for d in xs:
        p *= int(d)
    return p


def _round_up(x, m):
    return (x + m - 1) // m * m


def _chip_budget():
    """Chip-aware (tiling_budget_bytes, vmem_limit_bytes, tensorcores)."""
    try:
        vmem = int(pltpu.get_tpu_info().vmem_capacity_bytes)
    except Exception:
        vmem = 128 << 20                      # v5e / v6e default
    if vmem <= (64 << 20):                    # v7x: 64 MiB VMEM per TC, 2 TCs/chip
        limit, cores = 52 << 20, 2
    else:                                     # v5e / v6e: 128 MiB VMEM, 1 TC
        limit, cores = 96 << 20, 1
    return limit - (8 << 20), limit, cores


def _pick_row_tile(rows, io_row_bytes, scratch_row_bytes, fixed_bytes, budget,
                   cores, sublane):
    """Row tile: 2x double-buffered I/O + 1x compute scratch + fixed weights must fit
    the budget; rounded to MXU-friendly multiples; split across >=2 grid steps only
    when there are 2 TensorCores to shard onto (v7x)."""
    avail = budget - fixed_bytes
    denom = 2 * io_row_bytes + scratch_row_bytes
    tr = avail // denom if denom > 0 else sublane
    tr = max(sublane, int(tr))
    tr = min(tr, _MAX_ROW_TILE)
    if tr >= 256:
        tr = (tr // 256) * 256                # 2x256^2 MXU on v6e/v7x (128-mult on v5e)
    else:
        tr = max(sublane, (tr // sublane) * sublane)
    rows_padded = _round_up(rows, sublane)
    tr = min(tr, rows_padded)
    if cores >= 2 and rows_padded <= tr and rows_padded >= 512:
        tr = _round_up(pl.cdiv(rows_padded, 2), 256)   # feed both TensorCores
    return int(tr)


# --------------------------- kernel 1: standalone RMSNorm ---------------------------

def _rmsnorm_kernel(x_ref, w_ref, o_ref):
    x = x_ref[...].astype(jnp.float32)
    w = w_ref[...].astype(jnp.float32)
    ms = jnp.mean(x * x, axis=-1, keepdims=True)                 # (tr, 1)
    o_ref[...] = (x * (jax.lax.rsqrt(ms) * w + EPS)).astype(o_ref.dtype)


def rmsnorm(x, weight):
    """x: [..., H], weight: [H]  ->  x * (rsqrt(mean(x^2, -1)) * weight + eps)."""
    # TODO(synk): ideally fused into the attention QKV-projection kernel (its consumer)
    # to save one HBM round-trip; attention is not part of the provided spec.
    orig_shape = x.shape
    H = int(orig_shape[-1])
    rows = _prod(orig_shape[:-1])
    x2d = x.reshape(rows, H)
    w2d = weight.reshape(1, H)

    itemsize = jnp.dtype(x.dtype).itemsize
    sublane = max(8, 32 // itemsize)
    budget, limit, cores = _chip_budget()
    io_row_bytes = 2 * H * itemsize            # in + out tiles (double-buffered)
    scratch_row_bytes = H * 4                  # f32 working copy
    fixed = H * 4                              # norm weight (single-buffered)
    tr = _pick_row_tile(rows, io_row_bytes, scratch_row_bytes, fixed, budget,
                        cores, sublane)
    grid = (pl.cdiv(rows, tr),)

    out = pl.pallas_call(
        _rmsnorm_kernel,
        out_shape=jax.ShapeDtypeStruct((rows, H), x.dtype),
        grid=grid,
        in_specs=[
            pl.BlockSpec((tr, H), lambda i: (i, 0)),
            pl.BlockSpec((1, H), lambda i: (0, 0), pipeline_mode=pl.Buffered(1)),
        ],
        out_specs=pl.BlockSpec((tr, H), lambda i: (i, 0)),
        compiler_params=pltpu.CompilerParams(
            dimension_semantics=("parallel",),
            vmem_limit_bytes=limit),
        cost_estimate=pl.CostEstimate(
            flops=int(3 * rows * H),
            transcendentals=int(rows),
            bytes_accessed=int(2 * rows * H * itemsize + H * 4)),
    )(x2d, w2d)
    return out.reshape(orig_shape)


# --------------- kernel 2: fused residual-add + RMSNorm + SwiGLU FFN ---------------

def _resnorm_ffn_kernel(x_ref, r_ref, wn_ref, w12_ref, b12_ref, w3_ref, b3_ref,
                        o_ref, n_scr, acc_scr):
    f = pl.program_id(1)

    @pl.when(f == 0)
    def _():
        # residual add + RMSNorm (torch-verbatim eps placement), f32 on the VPU.
        h = x_ref[...].astype(jnp.float32) + r_ref[...].astype(jnp.float32)
        wn = wn_ref[...].astype(jnp.float32)
        ms = jnp.mean(h * h, axis=-1, keepdims=True)
        n = h * (jax.lax.rsqrt(ms) * wn + EPS)
        n_scr[...] = n.astype(jnp.bfloat16)          # bf16 MXU operand, f32 accumulation
        acc_scr[...] = jnp.zeros_like(acc_scr)

    tf = w3_ref.shape[0]                              # static F tile
    n = n_scr[...]
    # gate + up in ONE MXU pass: (tr, H) @ (H, 2*tf); per-tile layout [W1^T | W2^T].
    gu = jnp.dot(n, w12_ref[...], preferred_element_type=jnp.float32) + b12_ref[...]
    gate = gu[:, :tf]
    up = gu[:, tf:]
    act = up * jax.nn.sigmoid(up)                     # SiLU in f32 (EUP)
    # torch f32 path: elementwise product done in bf16; feeds the MXU as bf16 losslessly.
    inter = gate.astype(jnp.bfloat16) * act.astype(jnp.bfloat16)
    acc_scr[...] += jnp.dot(inter, w3_ref[...], preferred_element_type=jnp.float32)

    @pl.when(f == pl.num_programs(1) - 1)
    def _():
        o_ref[...] = (acc_scr[...] + b3_ref[...].astype(jnp.float32)).astype(o_ref.dtype)


def _pick_f_tile(H, F, weight_budget):
    """F tile: bf16 weight blocks (gate+up+down) double-buffered; a multiple of 128
    that divides F (F is a multiple of 128 in practice)."""
    per_f = 2 * 3 * H * 2                     # 2 buffers x (2 w12 cols + 1 w3 row) x bf16
    tf = (weight_budget // per_f) // 128 * 128
    tf = max(128, min(int(tf), F))
    if tf >= F:
        return F
    while F % tf != 0 and tf > 128:
        tf -= 128
    if F % tf != 0:
        return F                               # F not a 128-multiple: single resident block
    return tf


def fused_residual_rmsnorm_ffn(attn_out, residual, norm_w, w1, b1, w2, b2, w3, b3):
    """ffn(rmsnorm(attn_out + residual)) with torch-verbatim structure.

    attn_out/residual: [..., H]; w1, w2: [F, H]; b1, b2: [F]; w3: [H, F]; b3: [H].
    MXU operands (weights, normalized activation, `inter`) are bf16 with f32
    accumulation — a deliberate perf/precision trade vs. the torch f32-weight path.
    """
    orig_shape = attn_out.shape
    H = int(orig_shape[-1])
    F = int(w1.shape[0])
    rows = _prod(orig_shape[:-1])

    x2d = attn_out.reshape(rows, H)
    r2d = residual.reshape(rows, H)
    wn2d = norm_w.reshape(1, H)

    budget, limit, cores = _chip_budget()
    tf = _pick_f_tile(H, F, int(0.6 * budget))
    nf = F // tf

    # One-time layout prep: bf16 weights; gate/up interleaved per F tile so each grid
    # step reads a single (H, 2*tf) block [W1^T tile | W2^T tile] + [b1 tile | b2 tile].
    w1t = w1.T.astype(jnp.bfloat16).reshape(H, nf, tf)
    w2t = w2.T.astype(jnp.bfloat16).reshape(H, nf, tf)
    w12 = jnp.concatenate([w1t, w2t], axis=2).reshape(H, 2 * F)
    b12 = jnp.concatenate(
        [b1.astype(jnp.float32).reshape(nf, tf),
         b2.astype(jnp.float32).reshape(nf, tf)], axis=1).reshape(1, 2 * F)
    w3t = w3.T.astype(jnp.bfloat16)            # (F, H)
    b3r = b3.astype(jnp.float32).reshape(1, H)

    itemsize = jnp.dtype(attn_out.dtype).itemsize
    sublane = max(8, 32 // itemsize)
    # Double-buffered I/O rows vs single-copy compute scratch, sized separately.
    io_row_bytes = 3 * H * itemsize                                # x, residual, out
    scratch_row_bytes = H * 2 + H * 4 + 2 * tf * 4 + tf * 4 + 2 * tf * 2
    wbuf = 1 if nf == 1 else 2                                     # Buffered(1) when constant
    fixed = wbuf * (2 * H * tf + tf * H) * 2 + wbuf * 2 * tf * 4 + 2 * H * 4
    tr = _pick_row_tile(rows, io_row_bytes, scratch_row_bytes, fixed, budget,
                        cores, sublane)
    grid = (pl.cdiv(rows, tr), nf)             # F (reduction-style) axis last

    const1 = pl.Buffered(1)                    # constant-index inputs: single buffer
    wmode = pl.Buffered(1) if nf == 1 else None

    def spec(shape, imap, mode=None):
        if mode is None:
            return pl.BlockSpec(shape, imap)
        return pl.BlockSpec(shape, imap, pipeline_mode=mode)

    weight_bytes = (2 * H * F + F * H) * 2 + 2 * F * 4 + 2 * H * 4
    n_row_tiles = int(pl.cdiv(rows, tr))

    out = pl.pallas_call(
        _resnorm_ffn_kernel,
        out_shape=jax.ShapeDtypeStruct((rows, H), attn_out.dtype),
        grid=grid,
        in_specs=[
            spec((tr, H), lambda i, f: (i, 0)),                    # attention output rows
            spec((tr, H), lambda i, f: (i, 0)),                    # residual rows
            spec((1, H), lambda i, f: (0, 0), const1),             # norm weight
            spec((H, 2 * tf), lambda i, f: (0, f), wmode),         # [W1^T | W2^T] F-tile
            spec((1, 2 * tf), lambda i, f: (0, f), wmode),         # [b1 | b2] F-tile
            spec((tf, H), lambda i, f: (f, 0), wmode),             # W3^T F-tile
            spec((1, H), lambda i, f: (0, 0), const1),             # b3
        ],
        out_specs=pl.BlockSpec((tr, H), lambda i, f: (i, 0)),
        scratch_shapes=[
            pltpu.VMEM((tr, H), jnp.bfloat16),                     # normalized rows (bf16)
            pltpu.VMEM((tr, H), jnp.float32),                      # output accumulator
        ],
        compiler_params=pltpu.CompilerParams(
            dimension_semantics=("parallel", "arbitrary"),
            vmem_limit_bytes=limit),
        cost_estimate=pl.CostEstimate(
            flops=int(6 * rows * H * F + rows * (4 * H + 7 * F)),
            transcendentals=int(rows * F + rows),
            bytes_accessed=int(3 * rows * H * itemsize
                               + weight_bytes * (n_row_tiles if nf > 1 else 1))),
    )(x2d, r2d, wn2d, w12, b12, w3t, b3r)
    return out.reshape(orig_shape)


if __name__ == "__main__":
    # Small shapes consistent with the module; hidden/intermediate are multiples of 128
    # so every vector store is lane-dense and the F tiling needs no padding.
    B, S, H, F = 2, 64, 128, 256
    keys = jax.random.split(jax.random.PRNGKey(0), 8)
    x = jax.random.normal(keys[0], (B, S, H), dtype=jnp.float32)
    norm_w = jnp.ones((H,), dtype=jnp.float32)                     # torch.ones init
    w1 = jax.random.normal(keys[2], (F, H), jnp.float32) / jnp.sqrt(H)
    b1 = 0.01 * jax.random.normal(keys[3], (F,), jnp.float32)
    w2 = jax.random.normal(keys[4], (F, H), jnp.float32) / jnp.sqrt(H)
    b2 = 0.01 * jax.random.normal(keys[5], (F,), jnp.float32)
    w3 = jax.random.normal(keys[6], (H, F), jnp.float32) / jnp.sqrt(F)
    b3 = 0.01 * jax.random.normal(keys[7], (H,), jnp.float32)

    # ---- TransformerBlock forward, Pallas pieces ----
    residual = x
    x_norm = rmsnorm(x, norm_w)                                    # kernel 1 (feeds attention)
    # TODO(synk): ComplexMultiHeadAttentionV2 is not defined in the provided spec; a
    # deterministic stand-in tensor of the right shape replaces the attention output.
    attn_out = 0.1 * jax.random.normal(keys[1], (B, S, H), dtype=jnp.float32)
    out = fused_residual_rmsnorm_ffn(attn_out, residual, norm_w, w1, b1, w2, b2, w3, b3)
    jax.block_until_ready((x_norm, out))

    # ---- references ----
    def ref_rmsnorm(v, w):
        ms = jnp.mean(v * v, axis=-1, keepdims=True)
        return v * (jax.lax.rsqrt(ms) * w + EPS)

    hp = jax.lax.Precision.HIGHEST
    ref_n1 = ref_rmsnorm(x, norm_w)

    # (a) exact mirror of the kernel's bf16-operand MXU path (tight tolerance).
    n_bf = ref_rmsnorm(attn_out + residual, norm_w).reshape(-1, H).astype(jnp.bfloat16)
    gate = jnp.dot(n_bf, w1.T.astype(jnp.bfloat16), preferred_element_type=jnp.float32) + b1
    up = jnp.dot(n_bf, w2.T.astype(jnp.bfloat16), preferred_element_type=jnp.float32) + b2
    act = up * jax.nn.sigmoid(up)
    inter = gate.astype(jnp.bfloat16) * act.astype(jnp.bfloat16)
    ref_bf16 = (jnp.dot(inter, w3.T.astype(jnp.bfloat16),
                        preferred_element_type=jnp.float32) + b3).reshape(B, S, H)

    # (b) strict torch-verbatim f32-weight path — looser tolerance because the bf16
    #     weight cast is a deliberate, documented precision change.
    n32 = ref_rmsnorm(attn_out + residual, norm_w).reshape(-1, H)
    gate32 = jnp.dot(n32, w1.T, precision=hp) + b1
    up32 = jnp.dot(n32, w2.T, precision=hp) + b2
    act32 = up32 * jax.nn.sigmoid(up32)
    inter32 = (gate32.astype(jnp.bfloat16) * act32.astype(jnp.bfloat16)).astype(jnp.float32)
    ref_f32 = (jnp.dot(inter32, w3.T, precision=hp) + b3).reshape(B, S, H)

    assert x_norm.shape == x.shape and out.shape == x.shape and out.dtype == x.dtype
    assert jnp.allclose(x_norm, ref_n1, atol=1e-5, rtol=1e-5)
    assert jnp.allclose(out, ref_bf16, atol=2e-2, rtol=2e-2)
    assert jnp.allclose(out, ref_f32, atol=1e-1, rtol=1e-1)
    print("KERNEL_OK")
</pallas_src>

<mosaic_0001>
module attributes {stable_mosaic.version = 11 : i64} {
  func.func @_rmsnorm_kernel(%arg0: i32, %arg1: memref<128x128xf32, #tpu.memory_space<vmem>>, %arg2: memref<1x128xf32, #tpu.memory_space<vmem>>, %arg3: memref<128x128xf32, #tpu.memory_space<vmem>>) attributes {dimension_semantics = [#tpu.dimension_semantics<parallel>], iteration_bounds = array<i64: 1>, scalar_prefetch = 0 : i64, scratch_operands = 0 : i64, tpu.core_type = #tpu.core_type<tc>, window_params = [{transform_indices = @transform_0, window_bounds = array<i64: 128, 128>}, {pipeline_mode = #tpu.pipeline_mode<synchronous>, transform_indices = @transform_1, window_bounds = array<i64: 1, 128>}, {transform_indices = @transform_2, window_bounds = array<i64: 128, 128>}]} {
    %c0 = arith.constant 0 : index
    %c0_0 = arith.constant 0 : index
    %0 = vector.load %arg1[%c0, %c0_0] : memref<128x128xf32, #tpu.memory_space<vmem>>, vector<128x128xf32>
    %c0_1 = arith.constant 0 : index
    %c0_2 = arith.constant 0 : index
    %1 = vector.load %arg2[%c0_1, %c0_2] : memref<1x128xf32, #tpu.memory_space<vmem>>, vector<1x128xf32>
    %2 = arith.mulf %0, %0 : vector<128x128xf32>
    %cst = arith.constant dense<0.000000e+00> : vector<128xf32>
    %3 = vector.multi_reduction <add>, %2, %cst [1] : vector<128x128xf32> to vector<128xf32>
    %4 = vector.shape_cast %3 : vector<128xf32> to vector<128x1xf32>
    %cst_3 = arith.constant 1.280000e+02 : f32
    %5 = vector.broadcast %cst_3 : f32 to vector<128x1xf32>
    %6 = arith.divf %4, %5 : vector<128x1xf32>
    %7 = math.rsqrt %6 : vector<128x1xf32>
    %8 = vector.broadcast %7 : vector<128x1xf32> to vector<128x128xf32>
    %9 = vector.broadcast %1 : vector<1x128xf32> to vector<128x128xf32>
    %10 = arith.mulf %8, %9 : vector<128x128xf32>
    %cst_4 = arith.constant 9.99999974E-6 : f32
    %11 = vector.broadcast %cst_4 : f32 to vector<128x128xf32>
    %12 = arith.addf %10, %11 : vector<128x128xf32>
    %13 = arith.mulf %0, %12 : vector<128x128xf32>
    %c0_5 = arith.constant 0 : index
    %c0_6 = arith.constant 0 : index
    %14 = vector.load %arg3[%c0_5, %c0_6] : memref<128x128xf32, #tpu.memory_space<vmem>>, vector<128x128xf32>
    tpu.vector_store %arg3[%c0_5, %c0_6], %13 {strides = array<i32>} : memref<128x128xf32, #tpu.memory_space<vmem>>, vector<128x128xf32>,
    return
  }
  func.func @transform_0(%arg0: i32) -> (i32, i32) {
    %c0_i32 = arith.constant 0 : i32
    %c0_i32_0 = arith.constant 0 : i32
    return %arg0, %c0_i32 : i32, i32
  }
  func.func @transform_1(%arg0: i32) -> (i32, i32) {
    %c0_i32 = arith.constant 0 : i32
    %c0_i32_0 = arith.constant 0 : i32
    %c0_i32_1 = arith.constant 0 : i32
    return %c0_i32, %c0_i32_0 : i32, i32
  }
  func.func @transform_2(%arg0: i32) -> (i32, i32) {
    %c0_i32 = arith.constant 0 : i32
    %c0_i32_0 = arith.constant 0 : i32
    return %arg0, %c0_i32 : i32, i32
  }
}

</mosaic_0001>

<bundles_post_ra>
// kernel: tpu_custom_call.1
= control target key start
LH: loop header
LB: loop body
LE: loop exit
PB: predicated region body
PF: predicated region fallthrough
CT: control target
= control target key end

     0   :  { %7 = vsyncpa [#allocation3], 0  ;;  %s796_s0 = inlined_call_operand.hbm [shape: f32[128,128], index: 0, kind: input, shape index: {}]   ;;  %s797_s1 = inlined_call_operand.hbm [shape: f32[1,128], index: 1, kind: input, shape index: {}]   ;;  %s798_s2 = inlined_call_operand.hbm [shape: f32[128,128], index: 2, kind: output, shape index: {}]  }
   0x1   :  { %8 = vsyncpa [#allocation6], 0 }
   0x2   :  { %9 = vsyncpa [#allocation4], 0  ;;  %s14_s11 = sshll.u32 %s796_s0, 4  ;;  %s496_s12 = smov [#allocation2]   ;;  %s15_s11 = int_to_ptr.hbm [resolvable:$true] %s14_s11 }
   0x3   :  { %s16_s13 = sshll.u32 %s496_s12, 4  ;;  %s28_s16 = sshll.u32 %s797_s1, 4  ;;  %s17_s13 = int_to_ptr.vmem [resolvable:$true] %s16_s13  ;;  %s29_s16 = int_to_ptr.hbm [resolvable:$true] %s28_s16 }
   0x4   :  { %s497_s17 = smov 128   ;;  %s498_s18 = smov 8  }
   0x5   :  { %22 = dma.hbm_to_vmem [thread:$0]  %s15_s11, 2048, %s17_s13, [#allocation3], %s497_s17, %s497_s17, %s498_s18  }
   0x6   :  { %s499_s19 = smov [#allocation5]  }
   0x7   :  { %s30_s20 = sshll.u32 %s499_s19, 4  ;;  %s31_s20 = int_to_ptr.vmem [resolvable:$true] %s30_s20 }
   0x8   :  { %33 = dma.hbm_to_vmem [thread:$0]  %s29_s16, 16, %s31_s20, [#allocation6]  }
   0x9   :  { %490 = dma.done.wait [#allocation3], 2048  }
   0xa   :  { %491 = vsyncadd [#allocation3], 4294965248 }
   0xb   :  { %492 = dma.done.wait [#allocation6], 16  }
   0xc   :  { %493 = vsyncadd [#allocation6], 4294967280  ;;  %v526_v0 = vld [vmem:[#allocation2 + $0x20] sm:$0xff]  ;;  %v528_v1 = vld [vmem:[#allocation2 + $0x10] sm:$0xff]  ;;  %v500_v32 = vmov 128.0   ;;  %s501_s0 = smov [#allocation7]  }
   0xd   :  { %v530_v2 = vld [vmem:[#allocation2] sm:$0xff]  ;;  %v63_v3 = vmul.f32 %v526_v0, %v526_v0  ;;  %v61_v4 = vmul.f32 %v528_v1, %v528_v1  ;;  %v538_v6 = vld [vmem:[#allocation2 + $0x28] sm:$0xff]  ;;  %v540_v7 = vld [vmem:[#allocation2 + $0x18] sm:$0xff]  ;;  %384 = vrcp.f32 %v500_v32  ;;  %s361_s1 = sshll.u32 %s501_s0, 4  ;;  %s363_s23 = sshll.u32 %s798_s2, 4  ;;  %s362_s1 = int_to_ptr.vmem [resolvable:$true] %s361_s1  ;;  %s364_s23 = int_to_ptr.hbm [resolvable:$true] %s363_s23 }
   0xe   :  { %v59_v5 = vmul.f32 %v530_v2, %v530_v2  ;;  %v542_v8 = vld [vmem:[#allocation2 + $0x8] sm:$0xff]  ;;  %v64_v9 = vmul.f32 %v538_v6, %v538_v6  ;;  %v62_v10 = vmul.f32 %v540_v7, %v540_v7  ;;  %v550_v12 = vld [vmem:[#allocation2 + $0x40] sm:$0xff]  ;;  %v552_v13 = vld [vmem:[#allocation2 + $0x38] sm:$0xff] }
   0xf   :  { %83 = vadd.xlane.f32.xlu2 %v63_v3  ;;  %79 = vadd.xlane.f32.xlu1 %v61_v4  ;;  %v60_v11 = vmul.f32 %v542_v8, %v542_v8  ;;  %v554_v14 = vld [vmem:[#allocation2 + $0x30] sm:$0xff]  ;;  %v67_v15 = vmul.f32 %v550_v12, %v550_v12  ;;  %v66_v16 = vmul.f32 %v552_v13, %v552_v13  ;;  %v562_v18 = vld [vmem:[#allocation2 + $0x58] sm:$0xff]  ;;  %v566_v20 = vld [vmem:[#allocation2 + $0x48] sm:$0xff] }
  0x10   :  { %75 = vadd.xlane.f32.xlu0 %v59_v5  ;;  %v65_v17 = vmul.f32 %v554_v14, %v554_v14  ;;  %v564_v19 = vld [vmem:[#allocation2 + $0x50] sm:$0xff]  ;;  %v70_v21 = vmul.f32 %v562_v18, %v562_v18  ;;  %v68_v23 = vmul.f32 %v566_v20, %v566_v20  ;;  %v576_v25 = vld [vmem:[#allocation2 + $0x68] sm:$0xff]  ;;  %v578_v26 = vld [vmem:[#allocation2 + $0x60] sm:$0xff] }
  0x11   :  { %v69_v22 = vmul.f32 %v564_v19, %v564_v19  ;;  %v574_v24 = vld [vmem:[#allocation2 + $0x70] sm:$0xff]  ;;  %v72_v28 = vmul.f32 %v576_v25, %v576_v25  ;;  %v71_v29 = vmul.f32 %v578_v26, %v578_v26  ;;  %v586_v30 = vld [vmem:[#allocation2 + $0x78] sm:$0xff] }
  0x12   :  { %v73_v27 = vmul.f32 %v574_v24, %v574_v24  ;;  %v74_v31 = vmul.f32 %v586_v30, %v586_v30 }
  0x13   :  { %v385_v33 = vpop.eup %384 }
  0x14   :  { %v108_v34 = vmul.f32 128.0, %v385_v33  ;;  %vm112_vm0 = vweird.f32 %v385_v33 }
  0x16   :  { %v109_v35 = vsub.f32 1.0, %v108_v34 }
  0x17   :  { %85 = vadd.xlane.f32.xlu2 %v64_v9  ;;  %81 = vadd.xlane.f32.xlu1 %v62_v10  ;;  %v609_v9 = vld [vmem:[#allocation5] ss:$0 sm:$0xff] }
  0x18   :  { %77 = vadd.xlane.f32.xlu0 %v60_v11  ;;  %v110_v36 = vmul.f32 %v385_v33, %v109_v35 }
  0x1a   :  { %v111_v37 = vadd.f32 %v385_v33, %v110_v36 }
  0x1c   :  { %v590_v38 = vsel %vm112_vm0, %v385_v33, %v111_v37 }
  0x1f   :  { %91 = vadd.xlane.f32.xlu2 %v67_v15  ;;  %89 = vadd.xlane.f32.xlu1 %v66_v16 }
  0x20   :  { %87 = vadd.xlane.f32.xlu0 %v65_v17 }
  0x27   :  { %97 = vadd.xlane.f32.xlu2 %v70_v21  ;;  %95 = vadd.xlane.f32.xlu1 %v69_v22 }
  0x28   :  { %93 = vadd.xlane.f32.xlu0 %v68_v23 }
  0x2f   :  { %103 = vadd.xlane.f32.xlu2 %v73_v27  ;;  %101 = vadd.xlane.f32.xlu1 %v72_v28 }
  0x30   :  { %99 = vadd.xlane.f32.xlu0 %v71_v29 }
  0x38   :  { %105 = vadd.xlane.f32.xlu0 %v74_v31 }
  0x82   :  { %v84_v39 = vpop.xlane.xlu2 %83  ;;  %v80_v40 = vpop.xlane.xlu1 %79 }
  0x83   :  { %v118_v41 = vmul.f32 %v590_v38, %v84_v39  ;;  %v116_v42 = vmul.f32 %v590_v38, %v80_v40  ;;  %v76_v43 = vpop.xlane.xlu0 %75 }
  0x84   :  { %v114_v44 = vmul.f32 %v590_v38, %v76_v43 }
  0x85   :  { %386 = vrsqrt.f32 %v118_v41  ;;  %vm176_vm1 = vweird.f32 %v118_v41  ;;  %vm156_vm2 = vweird.f32 %v116_v42 }
  0x86   :  { %388 = vrsqrt.f32 %v116_v42  ;;  %vm136_vm3 = vweird.f32 %v114_v44 }
  0x87   :  { %390 = vrsqrt.f32 %v114_v44 }
  0x8a   :  { %v86_v45 = vpop.xlane.xlu2 %85  ;;  %v82_v46 = vpop.xlane.xlu1 %81 }
  0x8b   :  { %v387_v47 = vpop.eup %386  ;;  %v596_v48 = vmul.f32 %v590_v38, %v86_v45  ;;  %v599_v49 = vmul.f32 %v590_v38, %v82_v46  ;;  %v78_v50 = vpop.xlane.xlu0 %77 }
  0x8c   :  { %v389_v51 = vpop.eup %388  ;;  %v171_v52 = vmul.f32 %v387_v47, %v118_v41  ;;  %v602_v53 = vmul.f32 %v590_v38, %v78_v50  ;;  %vm177_vm4 = vweird.f32 %v387_v47 }
  0x8d   :  { %v391_v54 = vpop.eup %390  ;;  %v151_v55 = vmul.f32 %v389_v51, %v116_v42  ;;  %392 = vrsqrt.f32 %v596_v48  ;;  %vm157_vm5 = vweird.f32 %v389_v51  ;;  %vm186_vm7 = vweird.f32 %v596_v48  ;;  %vm178_vm9 = vmor %vm176_vm1, %vm177_vm4 }
  0x8e   :  { %v172_v56 = vmul.f32 %v387_v47, %v171_v52  ;;  %v131_v57 = vmul.f32 %v391_v54, %v114_v44  ;;  %394 = vrsqrt.f32 %v599_v49  ;;  %vm137_vm6 = vweird.f32 %v391_v54  ;;  %vm158_vm10 = vmor %vm156_vm2, %vm157_vm5 }
  0x8f   :  { %v152_v58 = vmul.f32 %v389_v51, %v151_v55  ;;  %396 = vrsqrt.f32 %v602_v53  ;;  %vm166_vm8 = vweird.f32 %v599_v49  ;;  %vm138_vm11 = vmor %vm136_vm3, %vm137_vm6  ;;  %vm146_vm0 = vweird.f32 %v602_v53 }
  0x90   :  { %v173_v59 = vmul.f32 0.5, %v172_v56  ;;  %v132_v60 = vmul.f32 %v391_v54, %v131_v57 }
  0x91   :  { %v153_v61 = vmul.f32 0.5, %v152_v58 }
  0x92   :  { %v174_v62 = vsub.f32 1.5, %v173_v59  ;;  %v133_v63 = vmul.f32 0.5, %v132_v60  ;;  %v92_v3 = vpop.xlane.xlu2 %91  ;;  %v90_v4 = vpop.xlane.xlu1 %89 }
  0x93   :  { %v607_v5 = vpop.eup %392  ;;  %v154_v10 = vsub.f32 1.5, %v153_v61  ;;  %v613_v11 = vmul.f32 %v590_v38, %v92_v3  ;;  %v88_v15 = vpop.xlane.xlu0 %87  ;;  %v628_v29 = vmul.f32 %v590_v38, %v90_v4 }
  0x94   :  { %v615_v16 = vpop.eup %394  ;;  %v175_v17 = vmul.f32 %v387_v47, %v174_v62  ;;  %v134_v21 = vsub.f32 1.5, %v133_v63  ;;  %v181_v22 = vmul.f32 %v607_v5, %v596_v48  ;;  %vm187_vm12 = vweird.f32 %v607_v5 }
  0x95   :  { %v620_v23 = vpop.eup %396  ;;  %v155_v27 = vmul.f32 %v389_v51, %v154_v10  ;;  %v161_v28 = vmul.f32 %v615_v16, %v599_v49  ;;  %398 = vrsqrt.f32 %v613_v11  ;;  %vm167_vm13 = vweird.f32 %v615_v16  ;;  %vm188_vm15 = vmor %vm186_vm7, %vm187_vm12 }
  0x96   :  { %v179_v31 = vsel %vm178_vm9, %v387_v47, %v175_v17  ;;  %v135_v32 = vmul.f32 %v391_v54, %v134_v21  ;;  %v182_v33 = vmul.f32 %v607_v5, %v181_v22  ;;  %v141_v34 = vmul.f32 %v620_v23, %v602_v53  ;;  %vm168_vm1 = vmor %vm166_vm8, %vm167_vm13 }
  0x97   :  { %v297_v35 = vmul.f32 %v609_v9, %v179_v31  ;;  %v159_v36 = vsel %vm158_vm10, %v389_v51, %v155_v27  ;;  %v162_v37 = vmul.f32 %v615_v16, %v161_v28  ;;  %400 = vrsqrt.f32 %v628_v29 }
  0x98   :  { %v295_v39 = vmul.f32 %v609_v9, %v159_v36  ;;  %v139_v40 = vsel %vm138_vm11, %v391_v54, %v135_v32  ;;  %v183_v41 = vmul.f32 0.5, %v182_v33  ;;  %v142_v42 = vmul.f32 %v620_v23, %v141_v34 }
  0x99   :  { %v313_v43 = vadd.f32 1e-05, %v297_v35  ;;  %v293_v45 = vmul.f32 %v609_v9, %v139_v40  ;;  %v163_v46 = vmul.f32 0.5, %v162_v37  ;;  %vm147_vm14 = vweird.f32 %v620_v23 }
  0x9a   :  { %v311_v47 = vadd.f32 1e-05, %v295_v39  ;;  %v184_v50 = vsub.f32 1.5, %v183_v41  ;;  %v143_v44 = vmul.f32 0.5, %v142_v42  ;;  %v98_v51 = vpop.xlane.xlu2 %97  ;;  %v96_v57 = vpop.xlane.xlu1 %95  ;;  %vm148_vm2 = vmor %vm146_vm0, %vm147_vm14  ;;  %vm216_vm3 = vweird.f32 %v613_v11 }
  0x9b   :  { %v645_v52 = vpop.eup %398  ;;  %v329_v55 = vmul.f32 %v313_v43, %v526_v0  ;;  %v309_v54 = vadd.f32 1e-05, %v293_v45  ;;  %v164_v56 = vsub.f32 1.5, %v163_v46  ;;  %v94_v58 = vpop.xlane.xlu0 %93  ;;  %v671_v4 = vmul.f32 %v590_v38, %v98_v51 }
  0x9c   :  { %v327_v59 = vmul.f32 %v311_v47, %v528_v1  ;;  %v185_v60 = vmul.f32 %v607_v5, %v184_v50  ;;  %v144_v61 = vsub.f32 1.5, %v143_v44  ;;  %v211_v62 = vmul.f32 %v645_v52, %v613_v11 }
  0x9d   :  { %345 = vst [vmem:[#allocation7 + $0x20] sm:$0xff] %v329_v55  ;;  %v325_v63 = vmul.f32 %v309_v54, %v530_v2  ;;  %v165_v0 = vmul.f32 %v615_v16, %v164_v56  ;;  %v661_v1 = vmul.f32 %v590_v38, %v88_v15  ;;  %vm217_vm4 = vweird.f32 %v645_v52 }
  0x9e   :  { %343 = vst [vmem:[#allocation7 + $0x10] sm:$0xff] %v327_v59  ;;  %v189_v3 = vsel %vm188_vm15, %v607_v5, %v185_v60  ;;  %v145_v2 = vmul.f32 %v620_v23, %v144_v61  ;;  %v212_v48 = vmul.f32 %v645_v52, %v211_v62  ;;  %v401_v5 = vpop.eup %400  ;;  %v686_v31 = vmul.f32 %v590_v38, %v96_v57  ;;  %vm218_vm5 = vmor %vm216_vm3, %vm217_vm4 }
  0x9f   :  { %341 = vst [vmem:[#allocation7] sm:$0xff] %v325_v63  ;;  %v298_v53 = vmul.f32 %v609_v9, %v189_v3  ;;  %v169_v10 = vsel %vm168_vm1, %v615_v16, %v165_v0  ;;  %402 = vrsqrt.f32 %v661_v1  ;;  %v201_v16 = vmul.f32 %v401_v5, %v628_v29 }
  0xa0   :  { %v296_v49 = vmul.f32 %v609_v9, %v169_v10  ;;  %v149_v15 = vsel %vm148_vm2, %v620_v23, %v145_v2  ;;  %v213_v17 = vmul.f32 0.5, %v212_v48  ;;  %404 = vrsqrt.f32 %v671_v4 }
  0xa1   :  { %v314_v21 = vadd.f32 1e-05, %v298_v53  ;;  %v294_v22 = vmul.f32 %v609_v9, %v149_v15  ;;  %v202_v33 = vmul.f32 %v401_v5, %v201_v16  ;;  %v690_v34 = vmul.f32 %v590_v38, %v94_v58 }
  0xa2   :  { %v312_v27 = vadd.f32 1e-05, %v296_v49  ;;  %v214_v28 = vsub.f32 1.5, %v213_v17  ;;  %v104_v35 = vpop.xlane.xlu2 %103  ;;  %406 = vrsqrt.f32 %v686_v31  ;;  %v102_v42 = vpop.xlane.xlu1 %101  ;;  %vm206_vm6 = vweird.f32 %v628_v29 }
  0xa3   :  { %v330_v32 = vmul.f32 %v314_v21, %v538_v6  ;;  %v310_v23 = vadd.f32 1e-05, %v294_v22  ;;  %v100_v36 = vpop.xlane.xlu0 %99  ;;  %v203_v6 = vmul.f32 0.5, %v202_v33  ;;  %408 = vrsqrt.f32 %v690_v34 }
  0xa4   :  { %v328_v37 = vmul.f32 %v312_v27, %v540_v7  ;;  %v215_v39 = vmul.f32 %v645_v52, %v214_v28  ;;  %v708_v46 = vmul.f32 %v590_v38, %v104_v35  ;;  %vm207_vm7 = vweird.f32 %v401_v5 }
  0xa5   :  { %v695_v40 = vpop.eup %402  ;;  %346 = vst [vmem:[#allocation7 + $0x28] sm:$0xff] %v330_v32  ;;  %v326_v41 = vmul.f32 %v310_v23, %v542_v8  ;;  %v204_v11 = vsub.f32 1.5, %v203_v6  ;;  %vm196_vm8 = vweird.f32 %v661_v1  ;;  %v717_v44 = vmul.f32 %v590_v38, %v102_v42  ;;  %vm208_vm9 = vmor %vm206_vm6, %vm207_vm7 }
  0xa6   :  { %v701_v43 = vpop.eup %404  ;;  %344 = vst [vmem:[#allocation7 + $0x18] sm:$0xff] %v328_v37  ;;  %v219_v7 = vsel %vm218_vm5, %v645_v52, %v215_v39  ;;  %v191_v45 = vmul.f32 %v695_v40, %v661_v1  ;;  %410 = vrsqrt.f32 %v708_v46  ;;  %v721_v54 = vmul.f32 %v590_v38, %v100_v36 }
  0xa7   :  { %342 = vst [vmem:[#allocation7 + $0x8] sm:$0xff] %v326_v41  ;;  %v301_v8 = vmul.f32 %v609_v9, %v219_v7  ;;  %v241_v47 = vmul.f32 %v701_v43, %v671_v4  ;;  %v205_v52 = vmul.f32 %v401_v5, %v204_v11  ;;  %vm246_vm10 = vweird.f32 %v671_v4 }
  0xa8   :  { %v192_v50 = vmul.f32 %v695_v40, %v191_v45  ;;  %v723_v56 = vpop.eup %406  ;;  %vm236_vm11 = vweird.f32 %v686_v31  ;;  %412 = vrsqrt.f32 %v717_v44  ;;  %vm197_vm12 = vweird.f32 %v695_v40 }
  0xa9   :  { %v317_v51 = vadd.f32 1e-05, %v301_v8  ;;  %v242_v55 = vmul.f32 %v701_v43, %v241_v47  ;;  %v409_v58 = vpop.eup %408  ;;  %v209_v60 = vsel %vm208_vm9, %v401_v5, %v205_v52  ;;  %v231_v62 = vmul.f32 %v723_v56, %v686_v31  ;;  %vm198_vm0 = vmor %vm196_vm8, %vm197_vm12 }
  0xaa   :  { %v193_v57 = vmul.f32 0.5, %v192_v50  ;;  %v300_v63 = vmul.f32 %v609_v9, %v209_v60  ;;  %v221_v29 = vmul.f32 %v409_v58, %v690_v34  ;;  %vm226_vm13 = vweird.f32 %v690_v34 }
  0xab   :  { %v333_v59 = vmul.f32 %v317_v51, %v550_v12  ;;  %v243_v61 = vmul.f32 0.5, %v242_v55  ;;  %vm247_vm14 = vweird.f32 %v701_v43  ;;  %v232_v12 = vmul.f32 %v723_v56, %v231_v62  ;;  %v106_v2 = vpop.xlane.xlu0 %105 }
  0xac   :  { %v194_v0 = vsub.f32 1.5, %v193_v57  ;;  %414 = vrsqrt.f32 %v721_v54  ;;  %v411_v48 = vpop.eup %410  ;;  %v316_v53 = vadd.f32 1e-05, %v300_v63  ;;  %v222_v5 = vmul.f32 %v409_v58, %v221_v29  ;;  %vm248_vm2 = vmor %vm246_vm10, %vm247_vm14 }
  0xad   :  { %349 = vst [vmem:[#allocation7 + $0x40] sm:$0xff] %v333_v59  ;;  %v244_v3 = vsub.f32 1.5, %v243_v61  ;;  %vm276_vm15 = vweird.f32 %v708_v46  ;;  %v233_v15 = vmul.f32 0.5, %v232_v12  ;;  %vm237_vm1 = vweird.f32 %v723_v56 }
  0xae   :  { %v195_v10 = vmul.f32 %v695_v40, %v194_v0  ;;  %v271_v17 = vmul.f32 %v411_v48, %v708_v46  ;;  %v413_v21 = vpop.eup %412  ;;  %v332_v22 = vmul.f32 %v316_v53, %v552_v13  ;;  %v223_v27 = vmul.f32 0.5, %v222_v5  ;;  %vm238_vm4 = vmor %vm236_vm11, %vm237_vm1 }
  0xaf   :  { %v245_v49 = vmul.f32 %v701_v43, %v244_v3  ;;  %v754_v1 = vmul.f32 %v590_v38, %v106_v2  ;;  %v234_v23 = vsub.f32 1.5, %v233_v15  ;;  %vm227_vm3 = vweird.f32 %v409_v58 }
  0xb0   :  { %v199_v16 = vsel %vm198_vm0, %v695_v40, %v195_v10  ;;  %v272_v33 = vmul.f32 %v411_v48, %v271_v17  ;;  %348 = vst [vmem:[#allocation7 + $0x38] sm:$0xff] %v332_v22  ;;  %v224_v35 = vsub.f32 1.5, %v223_v27  ;;  %v261_v36 = vmul.f32 %v413_v21, %v717_v44  ;;  %vm228_vm5 = vmor %vm226_vm13, %vm227_vm3 }
  0xb1   :  { %v299_v28 = vmul.f32 %v609_v9, %v199_v16  ;;  %v249_v32 = vsel %vm248_vm2, %v701_v43, %v245_v49  ;;  %v235_v39 = vmul.f32 %v723_v56, %v234_v23  ;;  %416 = vrsqrt.f32 %v754_v1 }
  0xb2   :  { %v304_v13 = vmul.f32 %v609_v9, %v249_v32  ;;  %v415_v37 = vpop.eup %414  ;;  %v273_v40 = vmul.f32 0.5, %v272_v33  ;;  %v225_v41 = vmul.f32 %v409_v58, %v224_v35  ;;  %v262_v6 = vmul.f32 %v413_v21, %v261_v36 }
  0xb3   :  { %v315_v4 = vadd.f32 1e-05, %v299_v28  ;;  %v251_v42 = vmul.f32 %v415_v37, %v721_v54  ;;  %v239_v7 = vsel %vm238_vm4, %v723_v56, %v235_v39  ;;  %vm277_vm6 = vweird.f32 %v411_v48 }
  0xb4   :  { %v320_v38 = vadd.f32 1e-05, %v304_v13  ;;  %v274_v45 = vsub.f32 1.5, %v273_v40  ;;  %v303_v11 = vmul.f32 %v609_v9, %v239_v7  ;;  %v229_v47 = vsel %vm228_vm5, %v409_v58, %v225_v41  ;;  %vm278_vm7 = vmor %vm276_vm15, %vm277_vm6 }
  0xb5   :  { %v331_v43 = vmul.f32 %v315_v4, %v554_v14  ;;  %v263_v31 = vmul.f32 0.5, %v262_v6  ;;  %v302_v50 = vmul.f32 %v609_v9, %v229_v47  ;;  %v252_v52 = vmul.f32 %v415_v37, %v251_v42 }
  0xb6   :  { %v336_v8 = vmul.f32 %v320_v38, %v562_v18  ;;  %v275_v51 = vmul.f32 %v411_v48, %v274_v45  ;;  %v319_v14 = vadd.f32 1e-05, %v303_v11  ;;  %vm266_vm8 = vweird.f32 %v717_v44 }
  0xb7   :  { %347 = vst [vmem:[#allocation7 + $0x30] sm:$0xff] %v331_v43  ;;  %v264_v34 = vsub.f32 1.5, %v263_v31  ;;  %vm267_vm9 = vweird.f32 %v413_v21  ;;  %v417_v55 = vpop.eup %416  ;;  %v318_v18 = vadd.f32 1e-05, %v302_v50  ;;  %v253_v57 = vmul.f32 0.5, %v252_v52 }
  0xb8   :  { %352 = vst [vmem:[#allocation7 + $0x58] sm:$0xff] %v336_v8  ;;  %v279_v56 = vsel %vm278_vm7, %v411_v48, %v275_v51  ;;  %v335_v58 = vmul.f32 %v319_v14, %v564_v19  ;;  %v281_v61 = vmul.f32 %v417_v55, %v754_v1  ;;  %vm268_vm10 = vmor %vm266_vm8, %vm267_vm9  ;;  %vm257_vm11 = vweird.f32 %v415_v37 }
  0xb9   :  { %v307_v59 = vmul.f32 %v609_v9, %v279_v56  ;;  %v265_v60 = vmul.f32 %v413_v21, %v264_v34  ;;  %v334_v62 = vmul.f32 %v318_v18, %v566_v20  ;;  %v254_v46 = vsub.f32 1.5, %v253_v57 }
  0xba   :  { %351 = vst [vmem:[#allocation7 + $0x50] sm:$0xff] %v335_v58  ;;  %v282_v0 = vmul.f32 %v417_v55, %v281_v61  ;;  %vm256_vm12 = vweird.f32 %v721_v54  ;;  %vm287_vm14 = vweird.f32 %v417_v55  ;;  %vm286_vm15 = vweird.f32 %v754_v1 }
  0xbb   :  { %v323_v63 = vadd.f32 1e-05, %v307_v59  ;;  %v269_v44 = vsel %vm268_vm10, %v413_v21, %v265_v60  ;;  %350 = vst [vmem:[#allocation7 + $0x48] sm:$0xff] %v334_v62  ;;  %v255_v3 = vmul.f32 %v415_v37, %v254_v46  ;;  %vm258_vm13 = vmor %vm256_vm12, %vm257_vm11 }
  0xbc   :  { %v306_v29 = vmul.f32 %v609_v9, %v269_v44  ;;  %v283_v12 = vmul.f32 0.5, %v282_v0  ;;  %vm288_vm0 = vmor %vm286_vm15, %vm287_vm14 }
  0xbd   :  { %v339_v19 = vmul.f32 %v323_v63, %v574_v24  ;;  %v259_v48 = vsel %vm258_vm13, %v415_v37, %v255_v3 }
  0xbe   :  { %v322_v2 = vadd.f32 1e-05, %v306_v29  ;;  %v305_v20 = vmul.f32 %v609_v9, %v259_v48  ;;  %v284_v53 = vsub.f32 1.5, %v283_v12 }
  0xbf   :  { %355 = vst [vmem:[#allocation7 + $0x70] sm:$0xff] %v339_v19 }
  0xc0   :  { %v338_v10 = vmul.f32 %v322_v2, %v576_v25  ;;  %v321_v5 = vadd.f32 1e-05, %v305_v20  ;;  %v285_v49 = vmul.f32 %v417_v55, %v284_v53 }
  0xc2   :  { %354 = vst [vmem:[#allocation7 + $0x68] sm:$0xff] %v338_v10  ;;  %v337_v54 = vmul.f32 %v321_v5, %v578_v26  ;;  %v289_v24 = vsel %vm288_vm0, %v417_v55, %v285_v49 }
  0xc3   :  { %v308_v15 = vmul.f32 %v609_v9, %v289_v24 }
  0xc4   :  { %353 = vst [vmem:[#allocation7 + $0x60] sm:$0xff] %v337_v54 }
  0xc5   :  { %v324_v17 = vadd.f32 1e-05, %v308_v15 }
  0xc7   :  { %v340_v25 = vmul.f32 %v324_v17, %v586_v30 }
  0xc9   :  { %356 = vst [vmem:[#allocation7 + $0x78] sm:$0xff] %v340_v25 }
  0xca   :  { %369 = dma.vmem_to_hbm [thread:$0]  %s362_s1, 2048, %s364_s23, [#allocation4], %s497_s17, %s497_s17, %s498_s18  }
  0xcb   :  { %494 = dma.done.wait [#allocation4], 2048  }
  0xcc   :  { %495 = vsyncadd [#allocation4], 4294965248 }
  0xcd   :  { %374 = vsyncpa [#allocation3], 1 }
  0xce   :  { %375 = vsyncpa [#allocation6], 1 }
  0xcf   :  { %376 = vsyncpa [#allocation4], 1 }

</bundles_post_ra>
